<compile_context>
chip_gen: v7x
topology: tpu7x:2x2x1
jax: 0.10.0
libtpu: 0.0.40
codegen_flags: <defaults>
</compile_context>

<pallas_src>
import functools

import jax
import jax.numpy as jnp
from jax.experimental import pallas as pl
from jax.experimental.pallas import tpu as pltpu


def _round_up(x, m):
    return ((x + m - 1) // m) * m


# ------------------------- Pallas kernel -------------------------

def _ensemble_dynamics_kernel(
    x_ref,                 # (bt, d_in)
    w1_ref, b1_ref,        # (d_in, HP1), (1, HP1)
    w2_ref, b2_ref,        # (HP1, HP2),  (1, HP2)
    wh_ref, bh_ref,        # (HP2, 2*PH), (1, 2*PH)
    minlv_ref, maxlv_ref,  # (1, PH), (1, PH)
    mean_ref,              # (bt, PH)   members packed along lanes: lane = e*d_out + d
    logvar_ref,            # (bt, PH)
):
    def swish(v):
        return v * jax.nn.sigmoid(v)

    def softplus(v):
        # numerically stable softplus (matches F.softplus semantics)
        return jnp.maximum(v, 0.0) + jnp.log1p(jnp.exp(-jnp.abs(v)))

    ph = mean_ref.shape[-1]

    x = x_ref[...]
    h = swish(jnp.dot(x, w1_ref[...], preferred_element_type=jnp.float32) + b1_ref[...])
    h = swish(jnp.dot(h, w2_ref[...], preferred_element_type=jnp.float32) + b2_ref[...])
    out = jnp.dot(h, wh_ref[...], preferred_element_type=jnp.float32) + bh_ref[...]

    # mean lanes [0, PH) -- lane-aligned static slice, unmasked lane-dense store.
    mean_ref[...] = out[:, :ph]

    # logvar lanes [PH, 2*PH); soft_clamp only these 128 lanes.
    lv = out[:, ph:]
    max_lv = maxlv_ref[...]          # (1, PH) broadcasts over batch rows
    min_lv = minlv_ref[...]
    lv = max_lv - softplus(max_lv - lv)
    lv = min_lv + softplus(lv - min_lv)
    logvar_ref[...] = lv


# ------------------------- weight packing -------------------------

def _pack_params(params):
    """Pack the per-member weights into lane-packed / block-diagonal matrices.

    In a real deployment this would be done once and cached; here it runs per call
    as a handful of cheap XLA ops.
    """
    w1, b1 = params["w1"], params["b1"]
    w2, b2 = params["w2"], params["b2"]
    wo, bo = params["wo"], params["bo"]
    E, d_in, h1 = w1.shape
    _, _, h2 = w2.shape
    d_out = wo.shape[-1] // 2

    HP1 = _round_up(E * h1, 128)
    HP2 = _round_up(E * h2, 128)
    PH = _round_up(E * d_out, 128)
    f32 = jnp.float32

    # layer 1: input shared by all members -> simple lane-stack.
    w1p = jnp.zeros((d_in, HP1), f32).at[:, : E * h1].set(
        jnp.transpose(w1, (1, 0, 2)).reshape(d_in, E * h1))
    b1p = jnp.zeros((1, HP1), f32).at[0, : E * h1].set(b1.reshape(-1))

    # layer 2: block-diagonal, head: block-structured (mean | logvar halves).
    w2p = jnp.zeros((HP1, HP2), f32)
    b2p = jnp.zeros((1, HP2), f32).at[0, : E * h2].set(b2.reshape(-1))
    whp = jnp.zeros((HP2, 2 * PH), f32)
    bhp = jnp.zeros((1, 2 * PH), f32)
    for e in range(E):
        w2p = w2p.at[e * h1:(e + 1) * h1, e * h2:(e + 1) * h2].set(w2[e])
        whp = whp.at[e * h2:(e + 1) * h2, e * d_out:(e + 1) * d_out].set(wo[e, :, :d_out])
        whp = whp.at[e * h2:(e + 1) * h2, PH + e * d_out:PH + (e + 1) * d_out].set(wo[e, :, d_out:])
        bhp = bhp.at[0, e * d_out:(e + 1) * d_out].set(bo[e, 0, :d_out])
        bhp = bhp.at[0, PH + e * d_out:PH + (e + 1) * d_out].set(bo[e, 0, d_out:])

    min_lv = jnp.zeros((1, PH), f32).at[0, : E * d_out].set(
        jnp.tile(params["min_logvar"].reshape(-1), E))
    max_lv = jnp.zeros((1, PH), f32).at[0, : E * d_out].set(
        jnp.tile(params["max_logvar"].reshape(-1), E))

    return dict(w1p=w1p, b1p=b1p, w2p=w2p, b2p=b2p, whp=whp, bhp=bhp,
                min_lv=min_lv, max_lv=max_lv,
                dims=(E, d_in, h1, h2, d_out, HP1, HP2, PH))


# ------------------------- wrapper -------------------------

def ensemble_dynamics_forward(obs_action, params, *, batch_tile=1024):
    """obs_action: (batch, obs_dim + action_dim) float32.

    Returns (mean, logvar), each (num_ensemble, batch, obs_dim + 1).
    """
    packed = _pack_params(params)
    E, d_in, h1, h2, d_out, HP1, HP2, PH = packed["dims"]
    batch = obs_action.shape[0]

    # Batch tile: multiple of 8; >=2 grid steps when batch allows so the
    # "parallel" grid axis can shard across both TensorCores on v7x.
    bt = min(_round_up(max(int(batch_tile), 8), 8), _round_up(batch, 8))
    if batch >= 16:
        bt = min(bt, _round_up(pl.cdiv(batch, 2), 8))
    padded_batch = _round_up(batch, bt)
    n_tiles = padded_batch // bt

    if padded_batch != batch:
        x = jnp.zeros((padded_batch, d_in), jnp.float32).at[:batch].set(obs_action)
    else:
        x = obs_action

    out_shape = (
        jax.ShapeDtypeStruct((padded_batch, PH), jnp.float32),   # mean, lane-packed
        jax.ShapeDtypeStruct((padded_batch, PH), jnp.float32),   # logvar, lane-packed
    )

    grid_spec = pltpu.PrefetchScalarGridSpec(
        num_scalar_prefetch=0,
        grid=(n_tiles,),
        in_specs=[
            pl.BlockSpec((bt, d_in), lambda b: (b, 0)),          # x (tiled over batch)
            pl.BlockSpec((d_in, HP1), lambda b: (0, 0)),         # packed weights: constant
            pl.BlockSpec((1, HP1), lambda b: (0, 0)),            #  index maps -> fetched once
            pl.BlockSpec((HP1, HP2), lambda b: (0, 0)),
            pl.BlockSpec((1, HP2), lambda b: (0, 0)),
            pl.BlockSpec((HP2, 2 * PH), lambda b: (0, 0)),
            pl.BlockSpec((1, 2 * PH), lambda b: (0, 0)),
            pl.BlockSpec((1, PH), lambda b: (0, 0)),
            pl.BlockSpec((1, PH), lambda b: (0, 0)),
        ],
        out_specs=[
            pl.BlockSpec((bt, PH), lambda b: (b, 0)),
            pl.BlockSpec((bt, PH), lambda b: (b, 0)),
        ],
    )

    flops = 2 * padded_batch * (d_in * HP1 + HP1 * HP2 + HP2 * 2 * PH)
    transcendentals = padded_batch * (HP1 + HP2 + 4 * PH)
    bytes_accessed = 4 * int(
        x.size
        + packed["w1p"].size + packed["b1p"].size
        + packed["w2p"].size + packed["b2p"].size
        + packed["whp"].size + packed["bhp"].size
        + packed["min_lv"].size + packed["max_lv"].size
        + 2 * padded_batch * PH
    )

    fn = pl.pallas_call(
        _ensemble_dynamics_kernel,
        out_shape=out_shape,
        grid_spec=grid_spec,
        compiler_params=pltpu.CompilerParams(
            dimension_semantics=("parallel",),
        ),
        cost_estimate=pl.CostEstimate(
            flops=int(flops),
            transcendentals=int(transcendentals),
            bytes_accessed=bytes_accessed,
        ),
    )
    mean_p, logvar_p = fn(
        x, packed["w1p"], packed["b1p"], packed["w2p"], packed["b2p"],
        packed["whp"], packed["bhp"], packed["min_lv"], packed["max_lv"])

    # Unpack lanes -> (E, batch, d_out).  Touches only the small packed slabs
    # (batch x 128 each); lanes >= E*d_out are padding junk and are dropped here.
    mean = jnp.transpose(
        mean_p[:batch, : E * d_out].reshape(batch, E, d_out), (1, 0, 2))
    logvar = jnp.transpose(
        logvar_p[:batch, : E * d_out].reshape(batch, E, d_out), (1, 0, 2))
    return mean, logvar


# ------------------------- parameter init (deterministic) -------------------------

def init_params(key, obs_dim, action_dim, hidden_dims, num_ensemble, with_reward=True):
    d_in = obs_dim + action_dim
    d_out = obs_dim + (1 if with_reward else 0)
    dims = [d_in] + list(hidden_dims)
    keys = jax.random.split(key, 2 * len(dims))

    def trunc_init(k, shape, fan_in):
        std = 1.0 / (2.0 * jnp.sqrt(float(fan_in)))
        return (std * jax.random.truncated_normal(k, -2.0, 2.0, shape)).astype(jnp.float32)

    params = {}
    params["w1"] = trunc_init(keys[0], (num_ensemble, dims[0], dims[1]), dims[0])
    params["b1"] = jnp.zeros((num_ensemble, 1, dims[1]), jnp.float32)
    params["w2"] = trunc_init(keys[1], (num_ensemble, dims[1], dims[2]), dims[1])
    params["b2"] = jnp.zeros((num_ensemble, 1, dims[2]), jnp.float32)
    params["wo"] = trunc_init(keys[2], (num_ensemble, dims[-1], 2 * d_out), dims[-1])
    params["bo"] = jnp.zeros((num_ensemble, 1, 2 * d_out), jnp.float32)
    params["max_logvar"] = jnp.ones((d_out,), jnp.float32) * 0.5
    params["min_logvar"] = jnp.ones((d_out,), jnp.float32) * -10.0
    return params


# ------------------------- pure-JAX reference (for sanity check) -------------------------

def reference_forward(obs_action, params):
    def swish(v):
        return v * jax.nn.sigmoid(v)

    h = jnp.einsum("bj,ejk->ebk", obs_action, params["w1"]) + params["b1"]
    h = swish(h)
    h = jnp.einsum("ebj,ejk->ebk", h, params["w2"]) + params["b2"]
    h = swish(h)
    out = jnp.einsum("ebj,ejk->ebk", h, params["wo"]) + params["bo"]
    mean, logvar = jnp.split(out, 2, axis=-1)
    max_lv = params["max_logvar"]
    min_lv = params["min_logvar"]
    logvar = max_lv - jax.nn.softplus(max_lv - logvar)
    logvar = min_lv + jax.nn.softplus(logvar - min_lv)
    return mean, logvar


# ------------------------- main -------------------------

if __name__ == "__main__":
    # small shapes consistent with EnsembleDynamicsModel(obs_dim, action_dim, hidden_dims)
    obs_dim, action_dim = 16, 8
    hidden_dims = (32, 32)
    num_ensemble = 7
    batch = 24   # exercises batch padding + a 2-step "parallel" grid

    key = jax.random.PRNGKey(0)
    k_param, k_x = jax.random.split(key)
    params = init_params(k_param, obs_dim, action_dim, hidden_dims, num_ensemble)
    obs_action = jax.random.normal(k_x, (batch, obs_dim + action_dim), dtype=jnp.float32)

    mean, logvar = ensemble_dynamics_forward(obs_action, params)
    mean = jax.block_until_ready(mean)
    logvar = jax.block_until_ready(logvar)

    # correctness check against plain-JAX reference
    mean_ref, logvar_ref = reference_forward(obs_action, params)
    assert mean.shape == (num_ensemble, batch, obs_dim + 1)
    assert logvar.shape == (num_ensemble, batch, obs_dim + 1)
    assert jnp.allclose(mean, mean_ref, atol=1e-5, rtol=1e-5)
    assert jnp.allclose(logvar, logvar_ref, atol=1e-5, rtol=1e-5)

    # TODO(synk): the obs_dim > 256 compression branch (obs_layers_in/out,
    # action_layer_in) and the bookkeeping methods (load_save / update_save /
    # get_decay_loss / set_elites / random_elite_idxs) are training-time /
    # numpy-side utilities and are not part of this forward kernel.
    print("KERNEL_OK")
</pallas_src>

<mosaic_0001>
module attributes {stable_mosaic.version = 11 : i64} {
  func.func @_ensemble_dynamics_kernel(%arg0: i32, %arg1: memref<16x24xf32, #tpu.memory_space<vmem>>, %arg2: memref<24x256xf32, #tpu.memory_space<vmem>>, %arg3: memref<1x256xf32, #tpu.memory_space<vmem>>, %arg4: memref<256x256xf32, #tpu.memory_space<vmem>>, %arg5: memref<1x256xf32, #tpu.memory_space<vmem>>, %arg6: memref<256x256xf32, #tpu.memory_space<vmem>>, %arg7: memref<1x256xf32, #tpu.memory_space<vmem>>, %arg8: memref<1x128xf32, #tpu.memory_space<vmem>>, %arg9: memref<1x128xf32, #tpu.memory_space<vmem>>, %arg10: memref<16x128xf32, #tpu.memory_space<vmem>>, %arg11: memref<16x128xf32, #tpu.memory_space<vmem>>) attributes {dimension_semantics = [#tpu.dimension_semantics<parallel>], iteration_bounds = array<i64: 2>, scalar_prefetch = 0 : i64, scratch_operands = 0 : i64, tpu.core_type = #tpu.core_type<tc>, window_params = [{transform_indices = @transform_0, window_bounds = array<i64: 16, 24>}, {pipeline_mode = #tpu.pipeline_mode<synchronous>, transform_indices = @transform_1, window_bounds = array<i64: 24, 256>}, {pipeline_mode = #tpu.pipeline_mode<synchronous>, transform_indices = @transform_2, window_bounds = array<i64: 1, 256>}, {pipeline_mode = #tpu.pipeline_mode<synchronous>, transform_indices = @transform_3, window_bounds = array<i64: 256, 256>}, {pipeline_mode = #tpu.pipeline_mode<synchronous>, transform_indices = @transform_4, window_bounds = array<i64: 1, 256>}, {pipeline_mode = #tpu.pipeline_mode<synchronous>, transform_indices = @transform_5, window_bounds = array<i64: 256, 256>}, {pipeline_mode = #tpu.pipeline_mode<synchronous>, transform_indices = @transform_6, window_bounds = array<i64: 1, 256>}, {pipeline_mode = #tpu.pipeline_mode<synchronous>, transform_indices = @transform_7, window_bounds = array<i64: 1, 128>}, {pipeline_mode = #tpu.pipeline_mode<synchronous>, transform_indices = @transform_8, window_bounds = array<i64: 1, 128>}, {transform_indices = @transform_9, window_bounds = array<i64: 16, 128>}, {transform_indices = @transform_10, window_bounds = array<i64: 16, 128>}]} {
    %c0 = arith.constant 0 : index
    %c0_0 = arith.constant 0 : index
    %0 = vector.load %arg1[%c0, %c0_0] : memref<16x24xf32, #tpu.memory_space<vmem>>, vector<16x24xf32>
    %c0_1 = arith.constant 0 : index
    %c0_2 = arith.constant 0 : index
    %1 = vector.load %arg2[%c0_1, %c0_2] : memref<24x256xf32, #tpu.memory_space<vmem>>, vector<24x256xf32>
    %cst = arith.constant dense<0.000000e+00> : vector<16x256xf32>
    %2 = tpu.matmul %0, %1, %cst {dimension_numbers = #tpu.dot_dimension_numbers<[1], [0], [0], [1], [0, 0, 1, 1], [], []>} : vector<16x24xf32>, vector<24x256xf32>, vector<16x256xf32> -> vector<16x256xf32>
    %c0_3 = arith.constant 0 : index
    %c0_4 = arith.constant 0 : index
    %3 = vector.load %arg3[%c0_3, %c0_4] : memref<1x256xf32, #tpu.memory_space<vmem>>, vector<1x256xf32>
    %4 = vector.broadcast %3 : vector<1x256xf32> to vector<16x256xf32>
    %5 = arith.addf %2, %4 : vector<16x256xf32>
    %6 = arith.negf %5 : vector<16x256xf32>
    %7 = math.exp %6 : vector<16x256xf32>
    %cst_5 = arith.constant 1.000000e+00 : f32
    %8 = vector.broadcast %cst_5 : f32 to vector<16x256xf32>
    %9 = arith.addf %8, %7 : vector<16x256xf32>
    %10 = arith.divf %8, %9 : vector<16x256xf32>
    %11 = arith.mulf %5, %10 : vector<16x256xf32>
    %c0_6 = arith.constant 0 : index
    %c0_7 = arith.constant 0 : index
    %12 = vector.load %arg4[%c0_6, %c0_7] : memref<256x256xf32, #tpu.memory_space<vmem>>, vector<256x256xf32>
    %cst_8 = arith.constant dense<0.000000e+00> : vector<16x256xf32>
    %13 = tpu.matmul %11, %12, %cst_8 {dimension_numbers = #tpu.dot_dimension_numbers<[1], [0], [0], [1], [0, 0, 1, 1], [], []>} : vector<16x256xf32>, vector<256x256xf32>, vector<16x256xf32> -> vector<16x256xf32>
    %c0_9 = arith.constant 0 : index
    %c0_10 = arith.constant 0 : index
    %14 = vector.load %arg5[%c0_9, %c0_10] : memref<1x256xf32, #tpu.memory_space<vmem>>, vector<1x256xf32>
    %15 = vector.broadcast %14 : vector<1x256xf32> to vector<16x256xf32>
    %16 = arith.addf %13, %15 : vector<16x256xf32>
    %17 = arith.negf %16 : vector<16x256xf32>
    %18 = math.exp %17 : vector<16x256xf32>
    %cst_11 = arith.constant 1.000000e+00 : f32
    %19 = vector.broadcast %cst_11 : f32 to vector<16x256xf32>
    %20 = arith.addf %19, %18 : vector<16x256xf32>
    %21 = arith.divf %19, %20 : vector<16x256xf32>
    %22 = arith.mulf %16, %21 : vector<16x256xf32>
    %c0_12 = arith.constant 0 : index
    %c0_13 = arith.constant 0 : index
    %23 = vector.load %arg6[%c0_12, %c0_13] : memref<256x256xf32, #tpu.memory_space<vmem>>, vector<256x256xf32>
    %cst_14 = arith.constant dense<0.000000e+00> : vector<16x256xf32>
    %24 = tpu.matmul %22, %23, %cst_14 {dimension_numbers = #tpu.dot_dimension_numbers<[1], [0], [0], [1], [0, 0, 1, 1], [], []>} : vector<16x256xf32>, vector<256x256xf32>, vector<16x256xf32> -> vector<16x256xf32>
    %c0_15 = arith.constant 0 : index
    %c0_16 = arith.constant 0 : index
    %25 = vector.load %arg7[%c0_15, %c0_16] : memref<1x256xf32, #tpu.memory_space<vmem>>, vector<1x256xf32>
    %26 = vector.broadcast %25 : vector<1x256xf32> to vector<16x256xf32>
    %27 = arith.addf %24, %26 : vector<16x256xf32>
    %28 = vector.extract_strided_slice %27 {offsets = [0, 0], sizes = [16, 128], strides = [1, 1]} : vector<16x256xf32> to vector<16x128xf32>
    %c0_17 = arith.constant 0 : index
    %c0_18 = arith.constant 0 : index
    %29 = vector.load %arg10[%c0_17, %c0_18] : memref<16x128xf32, #tpu.memory_space<vmem>>, vector<16x128xf32>
    tpu.vector_store %arg10[%c0_17, %c0_18], %28 {strides = array<i32>} : memref<16x128xf32, #tpu.memory_space<vmem>>, vector<16x128xf32>,
    %30 = vector.extract_strided_slice %27 {offsets = [0, 128], sizes = [16, 128], strides = [1, 1]} : vector<16x256xf32> to vector<16x128xf32>
    %c0_19 = arith.constant 0 : index
    %c0_20 = arith.constant 0 : index
    %31 = vector.load %arg9[%c0_19, %c0_20] : memref<1x128xf32, #tpu.memory_space<vmem>>, vector<1x128xf32>
    %c0_21 = arith.constant 0 : index
    %c0_22 = arith.constant 0 : index
    %32 = vector.load %arg8[%c0_21, %c0_22] : memref<1x128xf32, #tpu.memory_space<vmem>>, vector<1x128xf32>
    %33 = vector.broadcast %31 : vector<1x128xf32> to vector<16x128xf32>
    %34 = arith.subf %33, %30 : vector<16x128xf32>
    %cst_23 = arith.constant 0.000000e+00 : f32
    %35 = vector.broadcast %cst_23 : f32 to vector<16x128xf32>
    %36 = arith.maximumf %34, %35 : vector<16x128xf32>
    %37 = math.absf %34 : vector<16x128xf32>
    %cst_24 = arith.constant 0.000000e+00 : f32
    %38 = vector.broadcast %cst_24 : f32 to vector<16x128xf32>
    %39 = arith.subf %38, %37 : vector<16x128xf32>
    %40 = math.exp %39 : vector<16x128xf32>
    %41 = math.log1p %40 : vector<16x128xf32>
    %42 = arith.addf %36, %41 : vector<16x128xf32>
    %43 = vector.broadcast %31 : vector<1x128xf32> to vector<16x128xf32>
    %44 = arith.subf %43, %42 : vector<16x128xf32>
    %45 = vector.broadcast %32 : vector<1x128xf32> to vector<16x128xf32>
    %46 = arith.subf %44, %45 : vector<16x128xf32>
    %cst_25 = arith.constant 0.000000e+00 : f32
    %47 = vector.broadcast %cst_25 : f32 to vector<16x128xf32>
    %48 = arith.maximumf %46, %47 : vector<16x128xf32>
    %49 = math.absf %46 : vector<16x128xf32>
    %cst_26 = arith.constant 0.000000e+00 : f32
    %50 = vector.broadcast %cst_26 : f32 to vector<16x128xf32>
    %51 = arith.subf %50, %49 : vector<16x128xf32>
    %52 = math.exp %51 : vector<16x128xf32>
    %53 = math.log1p %52 : vector<16x128xf32>
    %54 = arith.addf %48, %53 : vector<16x128xf32>
    %55 = vector.broadcast %32 : vector<1x128xf32> to vector<16x128xf32>
    %56 = arith.addf %55, %54 : vector<16x128xf32>
    %c0_27 = arith.constant 0 : index
    %c0_28 = arith.constant 0 : index
    %57 = vector.load %arg11[%c0_27, %c0_28] : memref<16x128xf32, #tpu.memory_space<vmem>>, vector<16x128xf32>
    tpu.vector_store %arg11[%c0_27, %c0_28], %56 {strides = array<i32>} : memref<16x128xf32, #tpu.memory_space<vmem>>, vector<16x128xf32>,
    return
  }
  func.func @transform_0(%arg0: i32) -> (i32, i32) {
    %c0_i32 = arith.constant 0 : i32
    %c0_i32_0 = arith.constant 0 : i32
    return %arg0, %c0_i32 : i32, i32
  }
  func.func @transform_1(%arg0: i32) -> (i32, i32) {
    %c0_i32 = arith.constant 0 : i32
    %c0_i32_0 = arith.constant 0 : i32
    %c0_i32_1 = arith.constant 0 : i32
    return %c0_i32, %c0_i32_0 : i32, i32
  }
  func.func @transform_2(%arg0: i32) -> (i32, i32) {
    %c0_i32 = arith.constant 0 : i32
    %c0_i32_0 = arith.constant 0 : i32
    %c0_i32_1 = arith.constant 0 : i32
    return %c0_i32, %c0_i32_0 : i32, i32
  }
  func.func @transform_3(%arg0: i32) -> (i32, i32) {
    %c0_i32 = arith.constant 0 : i32
    %c0_i32_0 = arith.constant 0 : i32
    %c0_i32_1 = arith.constant 0 : i32
    return %c0_i32, %c0_i32_0 : i32, i32
  }
  func.func @transform_4(%arg0: i32) -> (i32, i32) {
    %c0_i32 = arith.constant 0 : i32
    %c0_i32_0 = arith.constant 0 : i32
    %c0_i32_1 = arith.constant 0 : i32
    return %c0_i32, %c0_i32_0 : i32, i32
  }
  func.func @transform_5(%arg0: i32) -> (i32, i32) {
    %c0_i32 = arith.constant 0 : i32
    %c0_i32_0 = arith.constant 0 : i32
    %c0_i32_1 = arith.constant 0 : i32
    return %c0_i32, %c0_i32_0 : i32, i32
  }
  func.func @transform_6(%arg0: i32) -> (i32, i32) {
    %c0_i32 = arith.constant 0 : i32
    %c0_i32_0 = arith.constant 0 : i32
    %c0_i32_1 = arith.constant 0 : i32
    return %c0_i32, %c0_i32_0 : i32, i32
  }
  func.func @transform_7(%arg0: i32) -> (i32, i32) {
    %c0_i32 = arith.constant 0 : i32
    %c0_i32_0 = arith.constant 0 : i32
    %c0_i32_1 = arith.constant 0 : i32
    return %c0_i32, %c0_i32_0 : i32, i32
  }
  func.func @transform_8(%arg0: i32) -> (i32, i32) {
    %c0_i32 = arith.constant 0 : i32
    %c0_i32_0 = arith.constant 0 : i32
    %c0_i32_1 = arith.constant 0 : i32
    return %c0_i32, %c0_i32_0 : i32, i32
  }
  func.func @transform_9(%arg0: i32) -> (i32, i32) {
    %c0_i32 = arith.constant 0 : i32
    %c0_i32_0 = arith.constant 0 : i32
    return %arg0, %c0_i32 : i32, i32
  }
  func.func @transform_10(%arg0: i32) -> (i32, i32) {
    %c0_i32 = arith.constant 0 : i32
    %c0_i32_0 = arith.constant 0 : i32
    return %arg0, %c0_i32 : i32, i32
  }
}

</mosaic_0001>

<bundles_post_ra>
// kernel: tpu_custom_call.1
= control target key start
LH: loop header
LB: loop body
LE: loop exit
PB: predicated region body
PF: predicated region fallthrough
CT: control target
= control target key end

     0   :  { %16 = vsyncpa [#allocation3], 0  ;;  %s1895_s0 = inlined_call_operand.vmem [shape: f32[32,24], index: 0, kind: input, shape index: {}]   ;;  %s1896_s1 = inlined_call_operand.vmem [shape: f32[24,256], index: 1, kind: input, shape index: {}]   ;;  %s1897_s2 = inlined_call_operand.vmem [shape: f32[1,256], index: 2, kind: input, shape index: {}]   ;;  %s1898_s3 = inlined_call_operand.hbm [shape: f32[256,256], index: 3, kind: input, shape index: {}]   ;;  %s1899_s4 = inlined_call_operand.vmem [shape: f32[1,256], index: 4, kind: input, shape index: {}]   ;;  %s1900_s5 = inlined_call_operand.hbm [shape: f32[256,256], index: 5, kind: input, shape index: {}]   ;;  %s1901_s6 = inlined_call_operand.vmem [shape: f32[1,256], index: 6, kind: input, shape index: {}]   ;;  %s1902_s7 = inlined_call_operand.vmem [shape: f32[1,128], index: 7, kind: input, shape index: {}]   ;;  %s1903_s8 = inlined_call_operand.vmem [shape: f32[1,128], index: 8, kind: input, shape index: {}]   ;;  %s1904_s9 = inlined_call_operand.hbm [shape: f32[32,128], index: 9, kind: output, shape index: {0}]   ;;  %s1905_s10 = inlined_call_operand.hbm [shape: f32[32,128], index: 10, kind: output, shape index: {1}]  }
   0x1   :  { %17 = vsyncpa [#allocation6], 0 }
   0x2   :  { %18 = vsyncpa [#allocation4], 0 }
   0x3   :  { %20 = vsyncpa [#allocation4 + $0x1], 0 }
   0x4   :  { %21 = vsyncpa [#allocation9], 0 }
   0x5   :  { %23 = vsyncpa [#allocation9 + $0x1], 0  ;;  %s1614_s13 = smov 0   ;;  %s1616_s14 = smov 0  }
   0x6   :  { %s1618_s15 = smov 0   ;;  %s1620_s16 = smov 0  }
   0x7 LB: > { %1913 = sst [smem:[#allocation14_spill]] %s1544_s15  ;;  %s1635_s17 = sadd.s32 4294967295, %s1548_s16   ;;  %s1548_s16 = sphi %s1620_s16, %s1929_s16   ;;  %s1544_s15 = sphi %s1618_s15, %s1931_s15   ;;  %s1540_s14 = sphi %s1616_s14, %s1933_s14   ;;  %s1536_s13 = sphi %s1614_s13, %s1932_s13  }
   0x8   : > { %s1106_s18 = sadd.s32 4294967294, %s1548_s16   ;;  %s1639_s19 = sadd.s32 1, %s1548_s16  }
   0x9   : > { %1914 = sst [smem:[#allocation15_spill]] %s1639_s19  ;;  %s230_s20 = sadd.s32 1, %s1544_s15 }
   0xa   : > { %s227_s21 = ssub.s32 %s1548_s16, %s1639_s19  ;;  %p240_p0 = scmp.ne.s32.totalorder %s1544_s15, %s1540_s14 }
   0xb   : > { %p228_p1 = scmp.eq.s32.totalorder %s227_s21, 0  ;;  %p241_p2 = scmp.eq.s32.totalorder %s1635_s17, 1 }
   0xc   : > { %p246_p3 = scmp.ne.s32.totalorder %s1540_s14, %s1536_s13  ;;  %p247_p4 = scmp.eq.s32.totalorder %s1106_s18, 1 }
   0xd   : > { %s1650_s22 = scalar_select %p228_p1, %s1544_s15, %s230_s20  }
   0xe   : > { %p1652_p5 = por %p241_p2, %p240_p0  ;;  %p1656_p6 = por %p247_p4, %p246_p3 }
   0xf   : > { %1915 = sst [smem:[#allocation16_spill]] %s1650_s22  ;;  %p1107_p7 = scmp.ge.s32.totalorder %s1548_s16, 1 }
  0x10   : > { %s1916_s23 = scalar_select %p1652_p5, 1, 0 }
  0x11   : > { %s1917_s24 = scalar_select %p1656_p6, 1, 0 }
  0x12   : > { %p280_p8 = scmp.lt.s32.totalorder %s1548_s16, 3  ;;  %p1906_p9 = scmp.eq.s32.totalorder %s1635_s17, 0 }
  0x13   : > { %1918 = sst [smem:[#allocation17_spill]] %s1917_s24  ;;  %s1550_s26 = smov [#allocation2]  }
  0x14   : > { %p1663_p10 = pnand %p1107_p7, %p280_p8  ;;  %s298_s27 = sshll.u32 %s1550_s26, 4  ;;  %s299_s27 = int_to_ptr.vmem [resolvable:$true] %s298_s27 }
  0x15   : > { %s1551_s29 = smov [#allocation5]   ;;  %s1390_s18 = scalar_lea.hbm %s1898_s3, 8192 }
  0x16   : > { %s1919_s25 = scalar_select %p1663_p10, 1, 0 }
  0x17   : > { %p1284_p11 = pneg %p1663_p10  ;;  %s314_s30 = sshll.u32 %s1551_s29, 4  ;;  %s1675_s30 = int_to_ptr.vmem [resolvable:$true] %s314_s30 }
  0x18   : > { %p1391_p13 = scmp.ne.s32.totalorder %s1898_s3, %s1390_s18  ;;  %p1397_p3 = scmp.lt.u32.totalorder %s1390_s18, %s1898_s3 }
  0x19   : > { %p1671_p12 = pnand %p1906_p9, %p1284_p11 }
  0x1b   : > { %p1392_p0 = pneg %p1671_p12 }
  0x1d   : > { %p1393_p1 = pnand %p1392_p0, %p1391_p13 }
  0x1f   : > { %p1394_p2 = pneg %p1393_p1 }
  0x21   : > { %p1399_p4 = pnand %p1397_p3, %p1394_p2 }
  0x23   : > { %1402 = shalt.err (!%p1399_p4)
}
  0x24   : > { %s1403_s29 = scalar_lea.vmem %s299_s27, 8192  ;;  %p1411_p9 = scmp.lt.s32.totalorder %s299_s27, %s299_s27 }
  0x25   : > { %p1404_p7 = scmp.ne.s32.totalorder %s299_s27, %s1403_s29  ;;  %p1412_p6 = scmp.lt.s32.totalorder %s1403_s29, %s1403_s29 }
  0x27   : > { %p1406_p8 = pnand %p1404_p7, %p1392_p0  ;;  %p1413_p5 = por %p1412_p6, %p1411_p9 }
  0x29   : > { %p1407_p11 = pneg %p1406_p8 }
  0x2b   : > { %p1414_p10 = pnand %p1413_p5, %p1407_p11 }
  0x2d   : > { %1417 = shalt.err (!%p1414_p10)
}
  0x2e   : > { %s1552_s11 = smov 256   ;;  %s1553_s12 = smov 16  }
  0x2f   : > { %1287 = dma.hbm_to_vmem [thread:$0]  (!%p1671_p12), %s1898_s3, 8192, %s299_s27, [#allocation3], %s1552_s11, %s1552_s11, %s1553_s12  }
  0x30   : > { %s1418_s26 = scalar_lea.hbm %s1900_s5, 8192 }
  0x31   : > { %p1419_p13 = scmp.ne.s32.totalorder %s1900_s5, %s1418_s26  ;;  %p1425_p9 = scmp.lt.u32.totalorder %s1418_s26, %s1900_s5 }
  0x33   : > { %p1421_p5 = pnand %p1419_p13, %p1392_p0 }
  0x35   : > { %p1422_p6 = pneg %p1421_p5 }
  0x37   : > { %p1427_p10 = pnand %p1425_p9, %p1422_p6 }
  0x39   : > { %1430 = shalt.err (!%p1427_p10)
}
  0x3a   : > { %s1431_s27 = scalar_lea.vmem %s1675_s30, 8192  ;;  %p1439_p4 = scmp.lt.s32.totalorder %s1675_s30, %s1675_s30 }
  0x3b   : > { %p1432_p1 = scmp.ne.s32.totalorder %s1675_s30, %s1431_s27  ;;  %p1440_p7 = scmp.lt.s32.totalorder %s1431_s27, %s1431_s27 }
  0x3d   : > { %p1434_p2 = pnand %p1432_p1, %p1392_p0  ;;  %p1441_p8 = por %p1440_p7, %p1439_p4 }
  0x3f   : > { %p1435_p3 = pneg %p1434_p2 }
  0x41   : > { %p1442_p11 = pnand %p1441_p8, %p1435_p3 }
  0x43   : > { %1445 = shalt.err (!%p1442_p11)
}
  0x44   : > { %1290 = dma.hbm_to_vmem [thread:$0]  (!%p1671_p12), %s1900_s5, 8192, %s1675_s30, [#allocation6], %s1552_s11, %s1552_s11, %s1553_s12  }
  0x45   : > { %p1921_p13 = scmp.ne.s32.totalorder %s1919_s25, 0 }
  0x46   : > { %p1922_p5 = scmp.eq.s32.totalorder (!%p1921_p13), %s1635_s17, 0 }
  0x47   : > { %348 = sbr.rel (%p1921_p13) target bundleno = 902 (0x386), region = 56 }
  0x4e   : > { %1519 = dma.done.wait (%p1922_p5), [#allocation3], 8192   ;;  %p1923_p0 = pmov %p1922_p5 }
  0x50   : > { %1521 = vsyncadd (%p1923_p0), [#allocation3], 4294959104  ;;  %p1924_p6 = pmov %p1923_p0 }
  0x51   : > { %p1925_p9 = pmov %p1923_p0 }
  0x52   : > { %1523 = dma.done.wait (%p1924_p6), [#allocation6], 8192  }
  0x53   : > { %1525 = vsyncadd (%p1925_p9), [#allocation6], 4294959104  ;;  %s1116_s24 = sshll.u32 %s1635_s17, 1  ;;  %v1554_v0 = vmov 0.0   ;;  %v406_v1 = vld [vmem:[%s1896_s1 + $0x8] sm:$0xff]  ;;  %v408_v2 = vld [vmem:[%s1896_s1 + $0x18] sm:$0xff] }
  0x54   : > { %494 = vmatprep.mubr.f32.mxu0 %v1554_v0  ;;  %p396_p12 = scmp.lt.s32.totalorder %s1116_s24, 3  ;;  %v405_v3 = vld [vmem:[%s1896_s1] sm:$0xff]  ;;  %v1140_v4 = vpack.c.bf16 %v408_v2, %v406_v1  ;;  %v407_v5 = vld [vmem:[%s1896_s1 + $0x10] sm:$0xff]  ;;  %v410_v7 = vld [vmem:[%s1896_s1 + $0x28] sm:$0xff]  ;;  %vm423_vm0 = vcmask 195584   ;;  %s1773_s22 = sand.u32 1, %s1540_s14  }
  0x55   : > { %v1142_v6 = vpack.c.bf16 %v407_v5, %v405_v3  ;;  %v536_v8 = vld [vmem:[#allocation2 + $0x8] sm:$0xff]  ;;  %v409_v9 = vld [vmem:[%s1896_s1 + $0x20] sm:$0xff]  ;;  %v538_v10 = vld [vmem:[#allocation2 + $0x18] sm:$0xff]  ;;  %s1114_s21 = sshll.u32 %s1773_s22, 4  ;;  %s1138_s19 = sshll.u32 %s1635_s17, 8 }
  0x56   : > { %s1935_s24 = smov (!%p396_p12, %s1116_s24), 3  ;;  %1141 = vmatprep.subr.bf16.mxu0 %v1140_v4  ;;  %v535_v11 = vld [vmem:[#allocation2] sm:$0xff]  ;;  %v537_v12 = vld [vmem:[#allocation2 + $0x10] sm:$0xff]  ;;  %v1144_v13 = vpack.c.bf16 %v538_v10, %v536_v8  ;;  %v540_v15 = vld [vmem:[#allocation2 + $0x28] sm:$0xff]  ;;  %s387_s26 = scalar_lea.vmem [#allocation7], %s1114_s21 }
  0x57   : > { %s1117_s18 = sshll.u32 %s1935_s24, 3  ;;  %1143 = vmatpush1.bf16.msra.mxu0 %v1142_v6  ;;  %v1146_v14 = vpack.c.bf16 %v537_v12, %v535_v11  ;;  %v542_v16 = vld [vmem:[#allocation2 + $0x38] sm:$0xff]  ;;  %v539_v17 = vld [vmem:[#allocation2 + $0x20] sm:$0xff]  ;;  %v541_v19 = vld [vmem:[#allocation2 + $0x30] sm:$0xff]  ;;  %s974_s29 = sshll.u32 %s387_s26, 4  ;;  %s1789_s29 = int_to_ptr.vmem [resolvable:$true] %s974_s29 }
  0x58   : > { %s399_s24 = scalar_lea.vmem %s1895_s0, %s1117_s18  ;;  %434 = vmatprep.subr.mxu0 %v410_v7  ;;  %v1148_v18 = vpack.c.bf16 %v542_v16, %v540_v15  ;;  %v544_v20 = vld [vmem:[#allocation2 + $0x48] sm:$0xff]  ;;  %v546_v21 = vld [vmem:[#allocation2 + $0x58] sm:$0xff]  ;;  %1145 = vmatprep.subr.bf16.mxu1 %v1144_v13  ;;  %v1150_v23 = vpack.c.bf16 %v541_v19, %v539_v17  ;;  %v543_v25 = vld [vmem:[#allocation2 + $0x40] sm:$0xff]  ;;  %s1799_s28 = scalar_lea.hbm %s1904_s9, %s1138_s19 }
  0x59   : > { %v403_v22 = vld [vmem:[%s399_s24] sm:$0xff]  ;;  %1147 = vmatpush1.bf16.msra.mxu1 %v1146_v14  ;;  %v1152_v24 = vpack.c.bf16 %v546_v21, %v544_v20  ;;  %v548_v27 = vld [vmem:[#allocation2 + $0x68] sm:$0xff]  ;;  %v550_v28 = vld [vmem:[#allocation2 + $0x78] sm:$0xff]  ;;  %s956_s30 = scalar_lea.sflag [#allocation4], %s1773_s22  ;;  %s1446_s11 = scalar_lea.vmem %s1789_s29, 256 }
  0x5a   : > { %1149 = vmatprep.subr.bf16.mxu1 %v1148_v18  ;;  %v545_v26 = vld [vmem:[#allocation2 + $0x50] sm:$0xff]  ;;  %v404_v29 = vld [vmem:[%s399_s24 + $0x8] sm:$0xff]  ;;  %v1156_v31 = vpack.c.bf16 %v550_v28, %v548_v27  ;;  %v547_v32 = vld [vmem:[#allocation2 + $0x60] sm:$0xff]  ;;  %p1447_p10 = scmp.ne.s32.totalorder %s1789_s29, %s1446_s11  ;;  %p1926_p1 = scmp.ne.s32.totalorder %s1916_s23, 0 }
  0x5b   : > { %435 = vmatpush1.msra.mxu0 %v409_v9  ;;  %v1154_v30 = vpack.c.bf16 %v545_v26, %v543_v25  ;;  %v549_v33 = vld [vmem:[#allocation2 + $0x70] sm:$0xff]  ;;  %v552_v34 = vld [vmem:[#allocation2 + $0x88] sm:$0xff]  ;;  %v554_v35 = vld [vmem:[#allocation2 + $0x98] sm:$0xff]  ;;  %s1555_s12 = smov [#allocation7]  }
  0x5c   : > { %1118 = vmatmul.mubr.msk.f32.vlgmr.msra.gmra.mrb[0].mxu0 %vm423_vm0, %v403_v22  ;;  %v1158_v36 = vpack.c.bf16 %v549_v33, %v547_v32  ;;  %v1160_v37 = vpack.c.bf16 %v554_v35, %v552_v34  ;;  %v551_v38 = vld [vmem:[#allocation2 + $0x80] sm:$0xff]  ;;  %v553_v39 = vld [vmem:[#allocation2 + $0x90] sm:$0xff]  ;;  %v556_v40 = vld [vmem:[#allocation2 + $0xa8] sm:$0xff]  ;;  %p1448_p2 = pnand %p1447_p10, %p1926_p1  ;;  %s1450_s18 = sshll.u32 %s1555_s12, 4  ;;  %s1451_s18 = int_to_ptr.vmem [resolvable:$false] %s1450_s18 }
  0x5d   : > { %500 = vmatprep.mubr.f32.mxu0 %v1554_v0  ;;  %1151 = vmatpush1.bf16.msra.mxu1 %v1150_v23  ;;  %v558_v41 = vld [vmem:[#allocation2 + $0xb8] sm:$0xff]  ;;  %v1162_v42 = vpack.c.bf16 %v553_v39, %v551_v38  ;;  %v555_v44 = vld [vmem:[#allocation2 + $0xa0] sm:$0xff]  ;;  %v557_v45 = vld [vmem:[#allocation2 + $0xb0] sm:$0xff]  ;;  %s1452_s20 = scalar_lea.vmem %s1451_s18, 512  ;;  %p1453_p4 = scmp.lt.s32.totalorder %s1789_s29, %s1451_s18 }
  0x5e   : > { %1153 = vmatprep.subr.bf16.mxu1 %v1152_v24  ;;  %v1164_v43 = vpack.c.bf16 %v558_v41, %v556_v40  ;;  %v560_v46 = vld [vmem:[#allocation2 + $0xc8] sm:$0xff]  ;;  %v562_v47 = vld [vmem:[#allocation2 + $0xd8] sm:$0xff]  ;;  %v1166_v48 = vpack.c.bf16 %v557_v45, %v555_v44  ;;  %v559_v50 = vld [vmem:[#allocation2 + $0xc0] sm:$0xff]  ;;  %p1449_p3 = pneg %p1448_p2  ;;  %p1454_p7 = scmp.lt.s32.totalorder %s1452_s20, %s1446_s11 }
  0x5f   : > { %v1168_v49 = vpack.c.bf16 %v562_v47, %v560_v46  ;;  %v561_v51 = vld [vmem:[#allocation2 + $0xd0] sm:$0xff]  ;;  %v564_v52 = vld [vmem:[#allocation2 + $0xe8] sm:$0xff]  ;;  %v566_v53 = vld [vmem:[#allocation2 + $0xf8] sm:$0xff] }
  0x60   : > { %1119 = vmatmul.mubr.msk.f32.gmra.mrb[2].mxu0 %vm423_vm0, %v404_v29  ;;  %v1170_v54 = vpack.c.bf16 %v561_v51, %v559_v50  ;;  %v1172_v55 = vpack.c.bf16 %v566_v53, %v564_v52  ;;  %v563_v56 = vld [vmem:[#allocation2 + $0xe0] sm:$0xff]  ;;  %v565_v57 = vld [vmem:[#allocation2 + $0xf0] sm:$0xff]  ;;  %v568_v59 = vld [vmem:[#allocation2 + $0x108] sm:$0xff]  ;;  %p1455_p8 = por %p1454_p7, %p1453_p4 }
  0x61   : > { %1155 = vmatpush1.bf16.msra.mxu1 %v1154_v30  ;;  %v1174_v58 = vpack.c.bf16 %v565_v57, %v563_v56  ;;  %v570_v60 = vld [vmem:[#allocation2 + $0x118] sm:$0xff]  ;;  %v567_v62 = vld [vmem:[#allocation2 + $0x100] sm:$0xff]  ;;  %v569_v63 = vld [vmem:[#allocation2 + $0x110] sm:$0xff] }
  0x62   : > { %1157 = vmatprep.subr.bf16.mxu1 %v1156_v31  ;;  %v1176_v61 = vpack.c.bf16 %v570_v60, %v568_v59  ;;  %v1178_v0 = vpack.c.bf16 %v569_v63, %v567_v62  ;;  %v572_v1 = vld [vmem:[#allocation2 + $0x128] sm:$0xff]  ;;  %v574_v2 = vld [vmem:[#allocation2 + $0x138] sm:$0xff]  ;;  %v571_v4 = vld [vmem:[#allocation2 + $0x120] sm:$0xff]  ;;  %p1456_p11 = pnand %p1455_p8, %p1449_p3 }
  0x63   : > { %v1180_v3 = vpack.c.bf16 %v574_v2, %v572_v1  ;;  %v573_v5 = vld [vmem:[#allocation2 + $0x130] sm:$0xff]  ;;  %v576_v7 = vld [vmem:[#allocation2 + $0x148] sm:$0xff]  ;;  %v578_v8 = vld [vmem:[#allocation2 + $0x158] sm:$0xff] }
  0x64   : > { %v1182_v6 = vpack.c.bf16 %v573_v5, %v571_v4  ;;  %v1184_v9 = vpack.c.bf16 %v578_v8, %v576_v7  ;;  %v575_v10 = vld [vmem:[#allocation2 + $0x140] sm:$0xff]  ;;  %v577_v11 = vld [vmem:[#allocation2 + $0x150] sm:$0xff]  ;;  %v580_v13 = vld [vmem:[#allocation2 + $0x168] sm:$0xff] }
  0x65   : > { %1159 = vmatpush1.bf16.msra.mxu1 %v1158_v36  ;;  %v1186_v12 = vpack.c.bf16 %v577_v11, %v575_v10  ;;  %v582_v14 = vld [vmem:[#allocation2 + $0x178] sm:$0xff]  ;;  %v579_v16 = vld [vmem:[#allocation2 + $0x160] sm:$0xff]  ;;  %v581_v17 = vld [vmem:[#allocation2 + $0x170] sm:$0xff] }
  0x66   : > { %1161 = vmatprep.subr.bf16.mxu1 %v1160_v37  ;;  %v1188_v15 = vpack.c.bf16 %v582_v14, %v580_v13  ;;  %v1190_v18 = vpack.c.bf16 %v581_v17, %v579_v16  ;;  %v584_v19 = vld [vmem:[#allocation2 + $0x188] sm:$0xff]  ;;  %v586_v20 = vld [vmem:[#allocation2 + $0x198] sm:$0xff]  ;;  %v583_v22 = vld [vmem:[#allocation2 + $0x180] sm:$0xff] }
  0x67   : > { %v1192_v21 = vpack.c.bf16 %v586_v20, %v584_v19  ;;  %v585_v23 = vld [vmem:[#allocation2 + $0x190] sm:$0xff]  ;;  %v588_v25 = vld [vmem:[#allocation2 + $0x1a8] sm:$0xff]  ;;  %v590_v26 = vld [vmem:[#allocation2 + $0x1b8] sm:$0xff] }
  0x68   : > { %v1194_v24 = vpack.c.bf16 %v585_v23, %v583_v22  ;;  %v1196_v27 = vpack.c.bf16 %v590_v26, %v588_v25  ;;  %v587_v28 = vld [vmem:[#allocation2 + $0x1a0] sm:$0xff]  ;;  %v589_v29 = vld [vmem:[#allocation2 + $0x1b0] sm:$0xff]  ;;  %v592_v31 = vld [vmem:[#allocation2 + $0x1c8] sm:$0xff] }
  0x69   : > { %1163 = vmatpush1.bf16.msra.mxu1 %v1162_v42  ;;  %v1198_v30 = vpack.c.bf16 %v589_v29, %v587_v28  ;;  %v594_v32 = vld [vmem:[#allocation2 + $0x1d8] sm:$0xff]  ;;  %v591_v34 = vld [vmem:[#allocation2 + $0x1c0] sm:$0xff]  ;;  %v593_v35 = vld [vmem:[#allocation2 + $0x1d0] sm:$0xff] }
  0x6a   : > { %1165 = vmatprep.subr.bf16.mxu1 %v1164_v43  ;;  %v1200_v33 = vpack.c.bf16 %v594_v32, %v592_v31  ;;  %v1202_v36 = vpack.c.bf16 %v593_v35, %v591_v34  ;;  %v596_v37 = vld [vmem:[#allocation2 + $0x1e8] sm:$0xff]  ;;  %v598_v38 = vld [vmem:[#allocation2 + $0x1f8] sm:$0xff]  ;;  %v595_v40 = vld [vmem:[#allocation2 + $0x1e0] sm:$0xff] }
  0x6b   : > { %v1204_v39 = vpack.c.bf16 %v598_v38, %v596_v37  ;;  %v597_v41 = vld [vmem:[#allocation2 + $0x1f0] sm:$0xff]  ;;  %v717_v43 = vld [vmem:[#allocation5 + $0x8] sm:$0xff]  ;;  %v719_v44 = vld [vmem:[#allocation5 + $0x18] sm:$0xff] }
  0x6c   : > { %v1206_v42 = vpack.c.bf16 %v597_v41, %v595_v40  ;;  %v716_v45 = vld [vmem:[#allocation5] sm:$0xff]  ;;  %v1208_v46 = vpack.c.bf16 %v719_v44, %v717_v43  ;;  %v718_v47 = vld [vmem:[#allocation5 + $0x10] sm:$0xff]  ;;  %v729_v60 = vld [vmem:[#allocation5 + $0x68] sm:$0xff] }
  0x6d   : > { %1167 = vmatpush1.bf16.msra.mxu1 %v1166_v48  ;;  %v721_v48 = vld [vmem:[#allocation5 + $0x28] sm:$0xff]  ;;  %v1210_v50 = vpack.c.bf16 %v718_v47, %v716_v45  ;;  %v720_v52 = vld [vmem:[#allocation5 + $0x20] sm:$0xff]  ;;  %v722_v53 = vld [vmem:[#allocation5 + $0x30] sm:$0xff] }
  0x6e   : > { %1169 = vmatprep.subr.bf16.mxu1 %v1168_v49  ;;  %v723_v49 = vld [vmem:[#allocation5 + $0x38] sm:$0xff]  ;;  %1209 = vmatprep.subr.bf16.mxu0 %v1208_v46  ;;  %v1214_v56 = vpack.c.bf16 %v722_v53, %v720_v52  ;;  %v726_v59 = vld [vmem:[#allocation5 + $0x50] sm:$0xff]  ;;  %v733_v2 = vld [vmem:[#allocation5 + $0x88] sm:$0xff] }
  0x6f   : > { %v1212_v51 = vpack.c.bf16 %v723_v49, %v721_v48  ;;  %1211 = vmatpush1.bf16.msra.mxu0 %v1210_v50  ;;  %v730_v1 = vld [vmem:[#allocation5 + $0x70] sm:$0xff]  ;;  %v737_v8 = vld [vmem:[#allocation5 + $0xa8] sm:$0xff] }
  0x70   : > { %v734_v7 = vld [vmem:[#allocation5 + $0x90] sm:$0xff]  ;;  %v741_v14 = vld [vmem:[#allocation5 + $0xc8] sm:$0xff] }
  0x71   : > { %1171 = vmatpush1.bf16.msra.mxu1 %v1170_v54  ;;  %v725_v54 = vld [vmem:[#allocation5 + $0x48] sm:$0xff]  ;;  %1213 = vmatprep.subr.bf16.mxu0 %v1212_v51  ;;  %v738_v13 = vld [vmem:[#allocation5 + $0xb0] sm:$0xff] }
  0x72   : > { %1173 = vmatprep.subr.bf16.mxu1 %v1172_v55  ;;  %v727_v55 = vld [vmem:[#allocation5 + $0x58] sm:$0xff]  ;;  %v742_v19 = vld [vmem:[#allocation5 + $0xd0] sm:$0xff]  ;;  %v745_v20 = vld [vmem:[#allocation5 + $0xe8] sm:$0xff] }
  0x73   : > { %v1216_v57 = vpack.c.bf16 %v727_v55, %v725_v54  ;;  %1215 = vmatpush1.bf16.msra.mxu0 %v1214_v56  ;;  %v746_v25 = vld [vmem:[#allocation5 + $0xf0] sm:$0xff] }
  0x75   : > { %1175 = vmatpush1.bf16.msra.mxu1 %v1174_v58  ;;  %v724_v58 = vld [vmem:[#allocation5 + $0x40] sm:$0xff]  ;;  %1217 = vmatprep.subr.bf16.mxu0 %v1216_v57 }
  0x76   : > { %1177 = vmatprep.subr.bf16.mxu1 %v1176_v61  ;;  %v731_v61 = vld [vmem:[#allocation5 + $0x78] sm:$0xff]  ;;  %v1218_v62 = vpack.c.bf16 %v726_v59, %v724_v58 }
  0x77   : > { %v1220_v63 = vpack.c.bf16 %v731_v61, %v729_v60 }
  0x78   : > { %1219 = vmatpush1.bf16.msra.mxu0 %v1218_v62  ;;  %v749_v62 = vld [vmem:[#allocation5 + $0x108] sm:$0xff] }
  0x79   : > { %1179 = vmatpush1.bf16.msra.mxu1 %v1178_v0  ;;  %v728_v0 = vld [vmem:[#allocation5 + $0x60] sm:$0xff]  ;;  %1221 = vmatprep.subr.bf16.mxu0 %v1220_v63  ;;  %v751_v63 = vld [vmem:[#allocation5 + $0x118] sm:$0xff] }
  0x7a   : > { %1181 = vmatprep.subr.bf16.mxu1 %v1180_v3  ;;  %v735_v3 = vld [vmem:[#allocation5 + $0x98] sm:$0xff]  ;;  %v1222_v4 = vpack.c.bf16 %v730_v1, %v728_v0  ;;  %v1240_v0 = vpack.c.bf16 %v751_v63, %v749_v62  ;;  %v748_v1 = vld [vmem:[#allocation5 + $0x100] sm:$0xff] }
  0x7b   : > { %v1224_v5 = vpack.c.bf16 %v735_v3, %v733_v2  ;;  %v750_v2 = vld [vmem:[#allocation5 + $0x110] sm:$0xff] }
  0x7c   : > { %1223 = vmatpush1.bf16.msra.mxu0 %v1222_v4  ;;  %v1242_v3 = vpack.c.bf16 %v750_v2, %v748_v1  ;;  %v753_v4 = vld [vmem:[#allocation5 + $0x128] sm:$0xff] }
  0x7d   : > { %1183 = vmatpush1.bf16.msra.mxu1 %v1182_v6  ;;  %v732_v6 = vld [vmem:[#allocation5 + $0x80] sm:$0xff]  ;;  %1225 = vmatprep.subr.bf16.mxu0 %v1224_v5  ;;  %v755_v5 = vld [vmem:[#allocation5 + $0x138] sm:$0xff] }
  0x7e   : > { %1185 = vmatprep.subr.bf16.mxu1 %v1184_v9  ;;  %v739_v9 = vld [vmem:[#allocation5 + $0xb8] sm:$0xff]  ;;  %v1226_v10 = vpack.c.bf16 %v734_v7, %v732_v6  ;;  %v1244_v6 = vpack.c.bf16 %v755_v5, %v753_v4  ;;  %v752_v7 = vld [vmem:[#allocation5 + $0x120] sm:$0xff] }
  0x7f   : > { %v1228_v11 = vpack.c.bf16 %v739_v9, %v737_v8  ;;  %v754_v8 = vld [vmem:[#allocation5 + $0x130] sm:$0xff] }
  0x80   : > { %1227 = vmatpush1.bf16.msra.mxu0 %v1226_v10  ;;  %v1246_v9 = vpack.c.bf16 %v754_v8, %v752_v7  ;;  %v757_v10 = vld [vmem:[#allocation5 + $0x148] sm:$0xff] }
  0x81   : > { %1187 = vmatpush1.bf16.msra.mxu1 %v1186_v12  ;;  %v736_v12 = vld [vmem:[#allocation5 + $0xa0] sm:$0xff]  ;;  %1229 = vmatprep.subr.bf16.mxu0 %v1228_v11  ;;  %v759_v11 = vld [vmem:[#allocation5 + $0x158] sm:$0xff] }
  0x82   : > { %1189 = vmatprep.subr.bf16.mxu1 %v1188_v15  ;;  %v743_v15 = vld [vmem:[#allocation5 + $0xd8] sm:$0xff]  ;;  %v1230_v16 = vpack.c.bf16 %v738_v13, %v736_v12  ;;  %v1248_v12 = vpack.c.bf16 %v759_v11, %v757_v10  ;;  %v756_v13 = vld [vmem:[#allocation5 + $0x140] sm:$0xff] }
  0x83   : > { %v1232_v17 = vpack.c.bf16 %v743_v15, %v741_v14  ;;  %v758_v14 = vld [vmem:[#allocation5 + $0x150] sm:$0xff] }
  0x84   : > { %1231 = vmatpush1.bf16.msra.mxu0 %v1230_v16  ;;  %v1250_v15 = vpack.c.bf16 %v758_v14, %v756_v13  ;;  %v761_v16 = vld [vmem:[#allocation5 + $0x168] sm:$0xff] }
  0x85   : > { %1191 = vmatpush1.bf16.msra.mxu1 %v1190_v18  ;;  %v740_v18 = vld [vmem:[#allocation5 + $0xc0] sm:$0xff]  ;;  %1233 = vmatprep.subr.bf16.mxu0 %v1232_v17  ;;  %v763_v17 = vld [vmem:[#allocation5 + $0x178] sm:$0xff] }
  0x86   : > { %1193 = vmatprep.subr.bf16.mxu1 %v1192_v21  ;;  %v747_v21 = vld [vmem:[#allocation5 + $0xf8] sm:$0xff]  ;;  %v1234_v22 = vpack.c.bf16 %v742_v19, %v740_v18  ;;  %v1252_v18 = vpack.c.bf16 %v763_v17, %v761_v16  ;;  %v760_v19 = vld [vmem:[#allocation5 + $0x160] sm:$0xff] }
  0x87   : > { %v1236_v23 = vpack.c.bf16 %v747_v21, %v745_v20  ;;  %v762_v20 = vld [vmem:[#allocation5 + $0x170] sm:$0xff] }
  0x88   : > { %1235 = vmatpush1.bf16.msra.mxu0 %v1234_v22  ;;  %v1254_v21 = vpack.c.bf16 %v762_v20, %v760_v19  ;;  %v765_v22 = vld [vmem:[#allocation5 + $0x188] sm:$0xff] }
  0x89   : > { %1195 = vmatpush1.bf16.msra.mxu1 %v1194_v24  ;;  %v744_v24 = vld [vmem:[#allocation5 + $0xe0] sm:$0xff]  ;;  %1237 = vmatprep.subr.bf16.mxu0 %v1236_v23  ;;  %v767_v23 = vld [vmem:[#allocation5 + $0x198] sm:$0xff] }
  0x8a   : > { %1197 = vmatprep.subr.bf16.mxu1 %v1196_v27  ;;  %v1238_v26 = vpack.c.bf16 %v746_v25, %v744_v24  ;;  %v413_v27 = vlaneseq  ;;  %v1256_v24 = vpack.c.bf16 %v767_v23, %v765_v22  ;;  %v764_v25 = vld [vmem:[#allocation5 + $0x180] sm:$0xff] }
  0x8c   : > { %1239 = vmatpush1.bf16.msra.mxu0 %v1238_v26  ;;  %v414_v28 = vshrl.u32 %v413_v27, 7  ;;  %v766_v26 = vld [vmem:[#allocation5 + $0x190] sm:$0xff] }
  0x8d   : > { %1199 = vmatpush1.bf16.msra.mxu1 %v1198_v30  ;;  %v411_v30 = vld [vmem:[%s1897_s2] sm:$0x3]  ;;  %1241 = vmatprep.subr.bf16.mxu0 %v1240_v0  ;;  %v1258_v27 = vpack.c.bf16 %v766_v26, %v764_v25 }
  0x8e   : > { %1201 = vmatprep.subr.bf16.mxu1 %v1200_v33  ;;  %v1758_v29 = vsub.s32 0, %v414_v28  ;;  %v1763_v31 = vsub.s32 1, %v414_v28  ;;  %v769_v28 = vld [vmem:[#allocation5 + $0x1a8] sm:$0xff] }
  0x90   : > { %v416_v32 = vrot.slane %v411_v30, %v1758_v29  ;;  %v420_v33 = vrot.slane %v411_v30, %v1763_v31  ;;  %1243 = vmatpush1.bf16.msra.mxu0 %v1242_v3  ;;  %v771_v30 = vld [vmem:[#allocation5 + $0x1b8] sm:$0xff] }
  0x91   : > { %1203 = vmatpush1.bf16.msra.mxu1 %v1202_v36  ;;  %1245 = vmatprep.subr.bf16.mxu0 %v1244_v6 }
  0x92   : > { %1205 = vmatprep.subr.bf16.mxu1 %v1204_v39 }
  0x94   : > { %1247 = vmatpush1.bf16.msra.mxu0 %v1246_v9 }
  0x95   : > { %1207 = vmatpush1.bf16.msra.mxu1 %v1206_v42  ;;  %1249 = vmatprep.subr.bf16.mxu0 %v1248_v12 }
  0x98   : > { %1251 = vmatpush1.bf16.msra.mxu0 %v1250_v15  ;;  %v780_v15 = vld [vmem:[%s1901_s6] sm:$0x3] }
  0x99   : > { %1253 = vmatprep.subr.bf16.mxu0 %v1252_v18  ;;  %v785_v16 = vrot.slane %v780_v15, %v1758_v29  ;;  %v789_v17 = vrot.slane %v780_v15, %v1763_v31 }
  0x9c   : > { %1255 = vmatpush1.bf16.msra.mxu0 %v1254_v21  ;;  %v1786_v21 = vld [vmem:[%s1903_s8] ss:$0 sm:$0xff] }
  0x9d   : > { %1257 = vmatprep.subr.bf16.mxu0 %v1256_v24 }
  0xa0   : > { %1259 = vmatpush1.bf16.msra.mxu0 %v1258_v27 }
 0x12f   : > { %v496_v34 = vpop.f32.mrb[0].mxu0 }
 0x130   : > { %v497_v35 = vadd.f32 %v496_v34, %v416_v32  ;;  %v498_v36 = vpop.f32.mrb[1].mxu0  ;;  %v770_v34 = vld [vmem:[#allocation5 + $0x1b0] sm:$0xff] }
 0x131   : > { %v499_v37 = vadd.f32 %v498_v36, %v420_v33  ;;  %v773_v36 = vld [vmem:[#allocation5 + $0x1c8] sm:$0xff] }
 0x132   : > { %v1120_v38 = vmul.f32 -1.442695, %v497_v35 }
 0x133   : > { %v1121_v39 = vmul.f32 -1.442695, %v499_v37  ;;  %v502_v40 = vpop.f32.mrb[2].mxu0 }
 0x134   : > { %1342 = vpow2.f32 %v1120_v38  ;;  %v503_v41 = vadd.f32 %v502_v40, %v416_v32  ;;  %v504_v42 = vpop.f32.mrb[3].mxu0  ;;  %v1260_v32 = vpack.c.bf16 %v771_v30, %v769_v28  ;;  %v774_v40 = vld [vmem:[#allocation5 + $0x1d0] sm:$0xff] }
 0x135   : > { %1344 = vpow2.f32 %v1121_v39  ;;  %v505_v43 = vadd.f32 %v504_v42, %v420_v33  ;;  %v768_v33 = vld [vmem:[#allocation5 + $0x1a0] sm:$0xff]  ;;  %v777_v42 = vld [vmem:[#allocation5 + $0x1e8] sm:$0xff] }
 0x136   : > { %v1122_v44 = vmul.f32 -1.442695, %v503_v41  ;;  %1261 = vmatprep.subr.bf16.mxu0 %v1260_v32  ;;  %v772_v39 = vld [vmem:[#allocation5 + $0x1c0] sm:$0xff] }
 0x137   : > { %v1123_v45 = vmul.f32 -1.442695, %v505_v43 }
 0x138   : > { %1346 = vpow2.f32 %v1122_v44 }
 0x139   : > { %1348 = vpow2.f32 %v1123_v45  ;;  %v776_v45 = vld [vmem:[#allocation5 + $0x1e0] sm:$0xff] }
 0x13e   : > { %v1343_v46 = vpop.eup %1342 }
 0x13f   : > { %v1345_v47 = vpop.eup %1344  ;;  %v519_v48 = vadd.f32 1.0, %v1343_v46  ;;  %v778_v46 = vld [vmem:[#allocation5 + $0x1f0] sm:$0xff] }
 0x140   : > { %v520_v49 = vadd.f32 1.0, %v1345_v47  ;;  %v1270_v47 = vpack.c.bf16 %v778_v46, %v776_v45 }
 0x141   : > { %1350 = vrcp.f32 %v519_v48  ;;  %v599_v48 = vld [vmem:[%s1899_s4] sm:$0x3] }
 0x142   : > { %v1347_v50 = vpop.eup %1346  ;;  %1352 = vrcp.f32 %v520_v49  ;;  %v604_v49 = vrot.slane %v599_v48, %v1758_v29 }
 0x143   : > { %v1349_v51 = vpop.eup %1348  ;;  %v521_v52 = vadd.f32 1.0, %v1347_v50  ;;  %v608_v50 = vrot.slane %v599_v48, %v1763_v31 }
 0x144   : > { %v522_v53 = vadd.f32 1.0, %v1349_v51 }
 0x145   : > { %1354 = vrcp.f32 %v521_v52 }
 0x146   : > { %1356 = vrcp.f32 %v522_v53 }
 0x14b   : > { %v1351_v54 = vpop.eup %1350 }
 0x14c   : > { %v1353_v55 = vpop.eup %1352  ;;  %v531_v57 = vmul.f32 %v1351_v54, %v497_v35  ;;  %v1262_v35 = vpack.c.bf16 %v770_v34, %v768_v33 }
 0x14d   : > { %v532_v56 = vmul.f32 %v1353_v55, %v499_v37  ;;  %v775_v37 = vld [vmem:[#allocation5 + $0x1d8] sm:$0xff] }
 0x14e   : > { %1263 = vmatpush1.bf16.msra.mxu0 %v1262_v35  ;;  %v1264_v38 = vpack.c.bf16 %v775_v37, %v773_v36 }
 0x14f   : > { %v1355_v58 = vpop.eup %1354  ;;  %675 = vmatprep.mubr.f32.mxu1 %v532_v56 }
 0x150   : > { %v1357_v59 = vpop.eup %1356  ;;  %676 = vmatmul.mubr.f32.vlgmr.msra.gmra.mrb[0].mxu1 %v531_v57  ;;  %v533_v61 = vmul.f32 %v1355_v58, %v503_v41  ;;  %v1266_v41 = vpack.c.bf16 %v774_v40, %v772_v39  ;;  %1265 = vmatprep.subr.bf16.mxu0 %v1264_v38 }
 0x151   : > { %v534_v60 = vmul.f32 %v1357_v59, %v505_v43  ;;  %v779_v43 = vld [vmem:[#allocation5 + $0x1f8] sm:$0xff] }
 0x152   : > { %1267 = vmatpush1.bf16.msra.mxu0 %v1266_v41  ;;  %v1268_v44 = vpack.c.bf16 %v779_v43, %v777_v42 }
 0x153   : > { %681 = vmatprep.mubr.f32.mxu1 %v534_v60 }
 0x154   : > { %682 = vmatmul.mubr.f32.gmra.mrb[2].mxu1 %v533_v61  ;;  %1269 = vmatprep.subr.bf16.mxu0 %v1268_v44 }
 0x156   : > { %1271 = vmatpush1.bf16.msra.mxu0 %v1270_v47 }
 0x223   : > { %v677_v51 = vpop.f32.mrb[0].mxu1 }
 0x224   : > { %v678_v52 = vadd.f32 %v677_v51, %v604_v49  ;;  %v679_v53 = vpop.f32.mrb[1].mxu1 }
 0x225   : > { %v680_v54 = vadd.f32 %v679_v53, %v608_v50 }
 0x226   : > { %v1124_v55 = vmul.f32 -1.442695, %v678_v52 }
 0x227   : > { %v1125_v56 = vmul.f32 -1.442695, %v680_v54  ;;  %v683_v57 = vpop.f32.mrb[2].mxu1 }
 0x228   : > { %1358 = vpow2.f32 %v1124_v55  ;;  %v684_v58 = vadd.f32 %v683_v57, %v604_v49  ;;  %v685_v59 = vpop.f32.mrb[3].mxu1 }
 0x229   : > { %1360 = vpow2.f32 %v1125_v56  ;;  %v686_v60 = vadd.f32 %v685_v59, %v608_v50 }
 0x22a   : > { %v1126_v61 = vmul.f32 -1.442695, %v684_v58 }
 0x22b   : > { %v1127_v62 = vmul.f32 -1.442695, %v686_v60 }
 0x22c   : > { %1362 = vpow2.f32 %v1126_v61 }
 0x22d   : > { %1364 = vpow2.f32 %v1127_v62 }
 0x232   : > { %v1359_v63 = vpop.eup %1358 }
 0x233   : > { %v1361_v0 = vpop.eup %1360  ;;  %v700_v1 = vadd.f32 1.0, %v1359_v63 }
 0x234   : > { %v701_v2 = vadd.f32 1.0, %v1361_v0 }
 0x235   : > { %1366 = vrcp.f32 %v700_v1 }
 0x236   : > { %v1363_v3 = vpop.eup %1362  ;;  %1368 = vrcp.f32 %v701_v2 }
 0x237   : > { %v1365_v4 = vpop.eup %1364  ;;  %v702_v5 = vadd.f32 1.0, %v1363_v3 }
 0x238   : > { %v703_v6 = vadd.f32 1.0, %v1365_v4 }
 0x239   : > { %1370 = vrcp.f32 %v702_v5 }
 0x23a   : > { %1372 = vrcp.f32 %v703_v6 }
 0x23f   : > { %v1367_v7 = vpop.eup %1366 }
 0x240   : > { %v1369_v8 = vpop.eup %1368  ;;  %v712_v10 = vmul.f32 %v1367_v7, %v678_v52 }
 0x241   : > { %v713_v9 = vmul.f32 %v1369_v8, %v680_v54 }
 0x243   : > { %v1371_v11 = vpop.eup %1370  ;;  %856 = vmatprep.mubr.f32.mxu0 %v713_v9 }
 0x244   : > { %v1373_v12 = vpop.eup %1372  ;;  %857 = vmatmul.mubr.f32.vlgmr.msra.gmra.mrb[4].mxu0 %v712_v10  ;;  %v714_v14 = vmul.f32 %v1371_v11, %v684_v58 }
 0x245   : > { %v715_v13 = vmul.f32 %v1373_v12, %v686_v60 }
 0x247   : > { %862 = vmatprep.mubr.f32.mxu0 %v715_v13 }
 0x248   : > { %863 = vmatmul.mubr.f32.gmra.mrb[6].mxu0 %v714_v14 }
 0x317   : > { %v858_v18 = vpop.f32.mrb[4].mxu0 }
 0x318   : > { %v859_v19 = vadd.f32 %v858_v18, %v785_v16  ;;  %v860_v20 = vpop.f32.mrb[5].mxu0 }
 0x319   : > { %v861_v22 = vadd.f32 %v860_v20, %v789_v17 }
 0x31a   : > { %869 = vst [vmem:[%s387_s26] sm:$0xff] %v859_v19 }
 0x31b   : > { %v1792_v29 = vsub.f32 %v1786_v21, %v861_v22  ;;  %v864_v31 = vpop.f32.mrb[6].mxu0 }
 0x31c   : > { %v865_v23 = vadd.f32 %v864_v31, %v785_v16  ;;  %v866_v24 = vpop.f32.mrb[7].mxu0 }
 0x31d   : > { %v883_v25 = vand.u32 2147483647, %v1792_v29  ;;  %v867_v26 = vadd.f32 %v866_v24, %v789_v17 }
 0x31e   : > { %870 = vst [vmem:[%s387_s26 + $0x8] sm:$0xff] %v865_v23 }
 0x31f   : > { %v885_v27 = vsub.f32 0.0, %v883_v25  ;;  %v1803_v28 = vsub.f32 %v1786_v21, %v867_v26 }
 0x320   : > { %1459 = shalt.err (!%p1456_p11)
}
 0x321   : > { %s1460_s26 = scalar_lea.hbm %s1799_s28, 256  ;;  %s1464_s25 = scalar_lea.hbm %s1904_s9, 512 }
 0x322   : > { %p1461_p13 = scmp.ne.s32.totalorder %s1799_s28, %s1460_s26  ;;  %p1465_p6 = scmp.lt.u32.totalorder %s1799_s28, %s1904_s9 }
 0x323   : > { %p1466_p9 = scmp.lt.u32.totalorder %s1464_s25, %s1460_s26  ;;  %p1468_p10 = scmp.lt.u32.totalorder %s1460_s26, %s1799_s28 }
 0x324   : > { %p1462_p5 = pnand %p1461_p13, %p1926_p1 }
 0x325   : > { %p1467_p12 = por %p1466_p9, %p1465_p6 }
 0x326   : > { %p1463_p0 = pneg %p1462_p5 }
 0x327   : > { %p1469_p2 = por %p1468_p10, %p1467_p12 }
 0x329   : > { %p1470_p3 = pnand %p1469_p2, %p1463_p0 }
 0x32b   : > { %1473 = shalt.err (!%p1470_p3)
}
 0x32c   : > { %s1556_s11 = smov 128   ;;  %s1557_s18 = smov 8   ;;  %v887_v30 = vmul.f32 1.442695, %v885_v27  ;;  %v884_v32 = vand.u32 2147483647, %v1803_v28 }
 0x32d   : > { %1280 = dma.vmem_to_hbm [thread:$0]  (%p1926_p1), %s1789_s29, 256, %s1799_s28, %s956_s30, %s1556_s11, %s1556_s11, %s1557_s18   ;;  %v881_v47 = vmax.f32 %v1792_v29, 0.0  ;;  %v882_v56 = vmax.f32 %v1803_v28, 0.0 }
 0x32e   : > { %1374 = vpow2.f32 %v887_v30  ;;  %v886_v33 = vsub.f32 0.0, %v884_v32  ;;  %v1129_v52 = vld [vmem:[%s1902_s7] ss:$0 sm:$0xff]  ;;  %s394_s30 = scalar_lea.vmem [#allocation8], %s1114_s21  ;;  %s1849_s15 = scalar_lea.hbm %s1905_s10, %s1138_s19 }
 0x32f   : > { %s990_s20 = sshll.u32 %s394_s30, 4  ;;  %s961_s25 = scalar_lea.sflag [#allocation9], %s1773_s22  ;;  %s1842_s20 = int_to_ptr.vmem [resolvable:$true] %s990_s20 }
 0x330   : > { %v889_v34 = vmul.f32 1.442695, %v886_v33  ;;  %s1474_s24 = scalar_lea.vmem %s1842_s20, 256  ;;  %s1558_s21 = smov [#allocation8]  }
 0x331   : > { %p1475_p4 = scmp.ne.s32.totalorder %s1842_s20, %s1474_s24  ;;  %s1478_s12 = sshll.u32 %s1558_s21, 4  ;;  %s1479_s12 = int_to_ptr.vmem [resolvable:$false] %s1478_s12 }
 0x332   : > { %1376 = vpow2.f32 %v889_v34  ;;  %s1480_s29 = scalar_lea.vmem %s1479_s12, 512  ;;  %p1481_p11 = scmp.lt.s32.totalorder %s1842_s20, %s1479_s12 }
 0x333   : > { %p1476_p7 = pnand %p1475_p4, %p1926_p1  ;;  %p1482_p13 = scmp.lt.s32.totalorder %s1480_s29, %s1474_s24 }
 0x335   : > { %p1477_p8 = pneg %p1476_p7  ;;  %p1483_p5 = por %p1482_p13, %p1481_p11 }
 0x337   : > { %p1484_p0 = pnand %p1483_p5, %p1477_p8 }
 0x338   : > { %v1375_v35 = vpop.eup %1374 }
 0x339   : > { %v891_v36 = vadd.f32 1.0, %v1375_v35  ;;  %v894_v39 = vmul.f32 -0.5, %v1375_v35  ;;  %v897_v42 = vand.u32 2147483647, %v1375_v35 }
 0x33b   : > { %1378 = vlog2.f32 %v891_v36  ;;  %v895_v40 = vadd.f32 1.0, %v894_v39  ;;  %vm898_vm1 = vcmp.lt.f32.partialorder %v897_v42, 0.0004427343 }
 0x33c   : > { %v1377_v37 = vpop.eup %1376 }
 0x33d   : > { %v900_v38 = vadd.f32 1.0, %v1377_v37  ;;  %v903_v41 = vmul.f32 -0.5, %v1377_v37  ;;  %v896_v45 = vmul.f32 %v1375_v35, %v895_v40  ;;  %v906_v48 = vand.u32 2147483647, %v1377_v37 }
 0x33f   : > { %1380 = vlog2.f32 %v900_v38  ;;  %v904_v46 = vadd.f32 1.0, %v903_v41  ;;  %vm907_vm2 = vcmp.lt.f32.partialorder %v906_v48, 0.0004427343 }
 0x341   : > { %v905_v54 = vmul.f32 %v1377_v37, %v904_v46 }
 0x345   : > { %v1379_v43 = vpop.eup %1378 }
 0x346   : > { %v893_v44 = vmul.f32 0.6931472, %v1379_v43 }
 0x348   : > { %v899_v49 = vsel %vm898_vm1, %v896_v45, %v893_v44 }
 0x349   : > { %v1381_v50 = vpop.eup %1380  ;;  %v909_v51 = vadd.f32 %v899_v49, %v881_v47 }
 0x34a   : > { %v902_v53 = vmul.f32 0.6931472, %v1381_v50 }
 0x34b   : > { %v911_v55 = vsub.f32 %v1786_v21, %v909_v51 }
 0x34c   : > { %v908_v57 = vsel %vm907_vm2, %v905_v54, %v902_v53 }
 0x34d   : > { %v919_v58 = vsub.f32 %v911_v55, %v1129_v52  ;;  %v910_v59 = vadd.f32 %v908_v57, %v882_v56 }
 0x34f   : > { %v923_v60 = vand.u32 2147483647, %v919_v58  ;;  %v912_v61 = vsub.f32 %v1786_v21, %v910_v59  ;;  %v921_v16 = vmax.f32 %v919_v58, 0.0 }
 0x351   : > { %v925_v62 = vsub.f32 0.0, %v923_v60  ;;  %v920_v63 = vsub.f32 %v912_v61, %v1129_v52 }
 0x353   : > { %v927_v0 = vmul.f32 1.442695, %v925_v62  ;;  %v924_v1 = vand.u32 2147483647, %v920_v63  ;;  %v922_v31 = vmax.f32 %v920_v63, 0.0 }
 0x355   : > { %1382 = vpow2.f32 %v927_v0  ;;  %v926_v2 = vsub.f32 0.0, %v924_v1 }
 0x357   : > { %v929_v3 = vmul.f32 1.442695, %v926_v2 }
 0x359   : > { %1384 = vpow2.f32 %v929_v3 }
 0x35f   : > { %v1383_v4 = vpop.eup %1382 }
 0x360   : > { %v931_v5 = vadd.f32 1.0, %v1383_v4  ;;  %v934_v8 = vmul.f32 -0.5, %v1383_v4  ;;  %v937_v11 = vand.u32 2147483647, %v1383_v4 }
 0x362   : > { %1386 = vlog2.f32 %v931_v5  ;;  %v935_v9 = vadd.f32 1.0, %v934_v8  ;;  %vm938_vm3 = vcmp.lt.f32.partialorder %v937_v11, 0.0004427343 }
 0x363   : > { %v1385_v6 = vpop.eup %1384 }
 0x364   : > { %v940_v7 = vadd.f32 1.0, %v1385_v6  ;;  %v943_v10 = vmul.f32 -0.5, %v1385_v6  ;;  %v936_v14 = vmul.f32 %v1383_v4, %v935_v9  ;;  %v946_v17 = vand.u32 2147483647, %v1385_v6 }
 0x366   : > { %1388 = vlog2.f32 %v940_v7  ;;  %v944_v15 = vadd.f32 1.0, %v943_v10  ;;  %vm947_vm4 = vcmp.lt.f32.partialorder %v946_v17, 0.0004427343 }
 0x368   : > { %v945_v22 = vmul.f32 %v1385_v6, %v944_v15 }
 0x36c   : > { %v1387_v12 = vpop.eup %1386 }
 0x36d   : > { %v933_v13 = vmul.f32 0.6931472, %v1387_v12 }
 0x36f   : > { %v939_v18 = vsel %vm938_vm3, %v936_v14, %v933_v13 }
 0x370   : > { %v1389_v19 = vpop.eup %1388  ;;  %v949_v20 = vadd.f32 %v939_v18, %v921_v16 }
 0x371   : > { %v942_v21 = vmul.f32 0.6931472, %v1389_v19 }
 0x372   : > { %v951_v29 = vadd.f32 %v1129_v52, %v949_v20 }
 0x373   : > { %v948_v23 = vsel %vm947_vm4, %v945_v22, %v942_v21 }
 0x374   : > { %953 = vst [vmem:[%s394_s30] sm:$0xff] %v951_v29  ;;  %v950_v24 = vadd.f32 %v948_v23, %v922_v31 }
 0x376   : > { %v952_v25 = vadd.f32 %v1129_v52, %v950_v24 }
 0x378   : > { %954 = vst [vmem:[%s394_s30 + $0x8] sm:$0xff] %v952_v25 }
 0x379   : > { %1487 = shalt.err (!%p1484_p0)
}
 0x37a   : > { %s1488_s17 = scalar_lea.hbm %s1849_s15, 256  ;;  %s1492_s30 = scalar_lea.hbm %s1905_s10, 512 }
 0x37b   : > { %p1489_p6 = scmp.ne.s32.totalorder %s1849_s15, %s1488_s17  ;;  %p1493_p10 = scmp.lt.u32.totalorder %s1849_s15, %s1905_s10 }
 0x37c   : > { %p1494_p2 = scmp.lt.u32.totalorder %s1492_s30, %s1488_s17  ;;  %p1496_p4 = scmp.lt.u32.totalorder %s1488_s17, %s1849_s15 }
 0x37d   : > { %p1490_p9 = pnand %p1489_p6, %p1926_p1 }
 0x37e   : > { %p1495_p3 = por %p1494_p2, %p1493_p10 }
 0x37f   : > { %p1491_p12 = pneg %p1490_p9 }
 0x380   : > { %p1497_p7 = por %p1496_p4, %p1495_p3 }
 0x382   : > { %p1498_p8 = pnand %p1497_p7, %p1491_p12 }
 0x384   : > { %1501 = shalt.err (!%p1498_p8)
}
 0x385   : > { %1281 = dma.vmem_to_hbm [thread:$0]  (%p1926_p1), %s1842_s20, 256, %s1849_s15, %s961_s25, %s1556_s11, %s1556_s11, %s1557_s18  }
 0x386 PF: > { %s1927_s24 = sld [smem:[#allocation17_spill]]  ;;  %p1302_p11 = scmp.ge.s32.totalorder %s1548_s16, 2 }
 0x387   : > { %s1005_s21 = sand.u32 1, %s1536_s13  }
 0x388   : > { %s1006_s12 = scalar_lea.sflag [#allocation4], %s1005_s21 }
 0x38c   : > { %p1928_p13 = scmp.ne.s32.totalorder %s1927_s24, 0 }
 0x38e   : > { %p1292_p5 = pnand %p1302_p11, %p1928_p13 }
 0x390   : > { %1527 = dma.done.wait (!%p1292_p5), %s1006_s12, 256  }
 0x391   : > { %1529 = vsyncadd (!%p1292_p5), %s1006_s12, 4294967040  ;;  %s1015_s23 = scalar_lea.sflag [#allocation9], %s1005_s21 }
 0x392   : > { %1531 = dma.done.wait (!%p1292_p5), %s1015_s23, 256  }
 0x393   : > { %1533 = vsyncadd (!%p1292_p5), %s1015_s23, 4294967040  ;;  %s1929_s16 = sld [smem:[#allocation15_spill]]  ;;  %s1930_s22 = sld [smem:[#allocation14_spill]] }
 0x394   : > { %s1931_s15 = sld [smem:[#allocation16_spill]]  ;;  %s1932_s13 = smov %s1540_s14 }
 0x399   : > { %p26_p1 = scmp.ge.s32.totalorder %s1929_s16, 4   ;;  %s1933_s14 = smov %s1930_s22 }
 0x39b   :  { %28 = sbr.rel (!%p26_p1) target bundleno = 7 (0x7), region = 117 }
 0x3a2   :  { %1020 = vsyncpa [#allocation3], 1 }
 0x3a3   :  { %1022 = vsyncpa [#allocation3 + $0x1], 1 }
 0x3a4   :  { %1023 = vsyncpa [#allocation6], 1 }
 0x3a5   :  { %1024 = vsyncpa [#allocation4], 1 }
 0x3a6   :  { %1026 = vsyncpa [#allocation4 + $0x1], 1 }
 0x3a7   :  { %1027 = vsyncpa [#allocation9], 1 }
 0x3a8   :  { %1029 = vsyncpa [#allocation9 + $0x1], 1 }

</bundles_post_ra>
